<compile_context>
chip_gen: v5e
topology: v5e:2x2
jax: 0.10.0
libtpu: 0.0.40
codegen_flags: <defaults>
</compile_context>

<pallas_src>
import functools

import jax
import jax.numpy as jnp
from jax.experimental import pallas as pl
from jax.experimental.pallas import tpu as pltpu

LANES = 128            # lane-dense last dim -> unmasked full-lane stores
MAX_ROW_TILE = 2048    # 2048x128 f32 = 1 MiB per buffer (4 MiB total w/ dbl-buf)
MIN_ROW_TILE = 8       # sublane granule
NUM_HIDDEN = 5


def _mlp_kernel(params_ref, x_ref, o_ref, *, bf16_tanh: bool):
    # params_ref: SMEM f32[16] = [w1_0..4, b1_0..4, w2_0..4, b2]
    # x_ref / o_ref: (row_tile, LANES) f32 tiles in VMEM.
    x = x_ref[...]
    acc = jnp.zeros_like(x)
    for j in range(NUM_HIDDEN):  # unrolled: 5 VPU mul/add pairs + 5 EUP tanh
        pre = params_ref[j] * x + params_ref[NUM_HIDDEN + j]
        if bf16_tanh:
            # v7x option: bf16-native EUP/VPU halves transcendental cost.
            t = jnp.tanh(pre.astype(jnp.bfloat16)).astype(jnp.float32)
        else:
            t = jnp.tanh(pre)
        acc = acc + params_ref[2 * NUM_HIDDEN + j] * t
    o_ref[...] = acc + params_ref[3 * NUM_HIDDEN]


def _pick_row_tile(n_rows: int) -> int:
    """Row-tile: multiple of 8 (or full extent), capped at 1 MiB, >=2 grid steps."""
    if n_rows < 2 * MIN_ROW_TILE:
        return n_rows  # full extent along that dim is always a legal block dim
    half = ((n_rows + 1) // 2 + MIN_ROW_TILE - 1) // MIN_ROW_TILE * MIN_ROW_TILE
    return min(MAX_ROW_TILE, half)


def nonlinear_regression_forward(x, w1, b1, w2, b2, *, bf16_tanh: bool = False):
    """Forward pass matching the PyTorch module.

    x : (N, 1) float32
    w1: (5, 1) float32   (PyTorch Linear layout: out_features x in_features)
    b1: (5,)   float32
    w2: (1, 5) float32
    b2: (1,)   float32
    returns (N, 1) float32
    """
    n = x.shape[0]

    # Pack the 16 real parameters into one tiny SMEM-resident vector.
    params = jnp.concatenate(
        [w1.reshape(-1), b1.reshape(-1), w2.reshape(-1), b2.reshape(-1)]
    ).astype(jnp.float32)                                  # (16,)

    # Lane-dense slab: flat batch viewed as (rows, 128). All reshapes below are
    # free bitcasts; the pad/slice copies only happen when n % 128 != 0.
    x_flat = x.reshape(-1).astype(jnp.float32)
    rem = (-n) % LANES                                     # static (shape-derived)
    if rem:
        # TODO(synk): a fully copy-free ragged-lane path would need a 1-D tail
        # kernel; for n % 128 == 0 (the common large-batch case) this is skipped.
        x_flat = jnp.pad(x_flat, (0, rem))
    n_rows = x_flat.shape[0] // LANES
    x_slab = x_flat.reshape(n_rows, LANES)

    row_tile = _pick_row_tile(n_rows)
    grid = (pl.cdiv(n_rows, row_tile),)                    # partial last block OK

    out_slab = pl.pallas_call(
        functools.partial(_mlp_kernel, bf16_tanh=bf16_tanh),
        out_shape=jax.ShapeDtypeStruct((n_rows, LANES), jnp.float32),
        grid=grid,
        in_specs=[
            # Whole 16-element parameter vector, untiled, in scalar memory.
            pl.BlockSpec(memory_space=pltpu.MemorySpace.SMEM),
            pl.BlockSpec((row_tile, LANES), lambda i: (i, 0)),
        ],
        out_specs=pl.BlockSpec((row_tile, LANES), lambda i: (i, 0)),
        compiler_params=pltpu.CompilerParams(
            dimension_semantics=("parallel",)),
    )(params, x_slab)

    out_flat = out_slab.reshape(-1)
    if rem:
        out_flat = out_flat[:n]
    return out_flat.reshape(n, 1)


def _reference(x, w1, b1, w2, b2):
    h = jnp.tanh(x @ w1.T + b1)
    return h @ w2.T + b2


if __name__ == "__main__":
    key = jax.random.PRNGKey(0)
    k_x, k_w1, k_b1, k_w2, k_b2 = jax.random.split(key, 5)

    # PyTorch Linear shapes: linear1 weight (5,1)/bias (5,), linear2 (1,5)/(1,).
    w1 = jax.random.uniform(k_w1, (5, 1), jnp.float32, -1.0, 1.0)
    b1 = jax.random.uniform(k_b1, (5,), jnp.float32, -1.0, 1.0)
    w2 = jax.random.uniform(k_w2, (1, 5), jnp.float32, -0.5, 0.5)
    b2 = jax.random.uniform(k_b2, (1,), jnp.float32, -0.5, 0.5)

    # n=8: tiny + lane padding; n=300: lane padding, multi-row;
    # n=12800: zero-copy path (n % 128 == 0), multi-step grid + partial block.
    for n in (8, 300, 12800):
        xk = jax.random.fold_in(k_x, n)
        x = jax.random.normal(xk, (n, 1), jnp.float32)
        out = jax.block_until_ready(
            nonlinear_regression_forward(x, w1, b1, w2, b2))
        ref = _reference(x, w1, b1, w2, b2)
        assert out.shape == (n, 1), out.shape
        assert jnp.allclose(out, ref, atol=1e-5, rtol=1e-5), (n, out, ref)

    # Opt-in bf16-tanh path (v7x): checked with a looser tolerance.
    xb = jax.random.normal(k_x, (1024, 1), jnp.float32)
    outb = jax.block_until_ready(
        nonlinear_regression_forward(xb, w1, b1, w2, b2, bf16_tanh=True))
    refb = _reference(xb, w1, b1, w2, b2)
    assert outb.shape == (1024, 1)
    assert jnp.allclose(outb, refb, atol=5e-2), (outb, refb)

    print("KERNEL_OK")
</pallas_src>

<mosaic_0001>
module attributes {stable_mosaic.version = 11 : i64} {
  func.func @_mlp_kernel(%arg0: i32, %arg1: memref<16xf32, #tpu.memory_space<smem>>, %arg2: memref<1x128xf32, #tpu.memory_space<vmem>>, %arg3: memref<1x128xf32, #tpu.memory_space<vmem>>) attributes {dimension_semantics = [#tpu.dimension_semantics<parallel>], iteration_bounds = array<i64: 1>, scalar_prefetch = 0 : i64, scratch_operands = 0 : i64, tpu.core_type = #tpu.core_type<tc>, window_params = [{transform_indices = @transform_0, window_bounds = array<i64: 16>}, {transform_indices = @transform_1, window_bounds = array<i64: 1, 128>}, {transform_indices = @transform_2, window_bounds = array<i64: 1, 128>}]} {
    %c0 = arith.constant 0 : index
    %c0_0 = arith.constant 0 : index
    %0 = vector.load %arg2[%c0, %c0_0] : memref<1x128xf32, #tpu.memory_space<vmem>>, vector<1x128xf32>
    %cst = arith.constant 0.000000e+00 : f32
    %1 = vector.broadcast %cst : f32 to vector<1x128xf32>
    %c0_1 = arith.constant 0 : index
    %2 = memref.load %arg1[%c0_1] : memref<16xf32, #tpu.memory_space<smem>>
    %3 = vector.broadcast %2 : f32 to vector<1x128xf32>
    %4 = arith.mulf %3, %0 : vector<1x128xf32>
    %c5 = arith.constant 5 : index
    %5 = memref.load %arg1[%c5] : memref<16xf32, #tpu.memory_space<smem>>
    %6 = vector.broadcast %5 : f32 to vector<1x128xf32>
    %7 = arith.addf %4, %6 : vector<1x128xf32>
    %8 = math.tanh %7 : vector<1x128xf32>
    %c10 = arith.constant 10 : index
    %9 = memref.load %arg1[%c10] : memref<16xf32, #tpu.memory_space<smem>>
    %10 = vector.broadcast %9 : f32 to vector<1x128xf32>
    %11 = arith.mulf %10, %8 : vector<1x128xf32>
    %12 = arith.addf %1, %11 : vector<1x128xf32>
    %c1 = arith.constant 1 : index
    %13 = memref.load %arg1[%c1] : memref<16xf32, #tpu.memory_space<smem>>
    %14 = vector.broadcast %13 : f32 to vector<1x128xf32>
    %15 = arith.mulf %14, %0 : vector<1x128xf32>
    %c6 = arith.constant 6 : index
    %16 = memref.load %arg1[%c6] : memref<16xf32, #tpu.memory_space<smem>>
    %17 = vector.broadcast %16 : f32 to vector<1x128xf32>
    %18 = arith.addf %15, %17 : vector<1x128xf32>
    %19 = math.tanh %18 : vector<1x128xf32>
    %c11 = arith.constant 11 : index
    %20 = memref.load %arg1[%c11] : memref<16xf32, #tpu.memory_space<smem>>
    %21 = vector.broadcast %20 : f32 to vector<1x128xf32>
    %22 = arith.mulf %21, %19 : vector<1x128xf32>
    %23 = arith.addf %12, %22 : vector<1x128xf32>
    %c2 = arith.constant 2 : index
    %24 = memref.load %arg1[%c2] : memref<16xf32, #tpu.memory_space<smem>>
    %25 = vector.broadcast %24 : f32 to vector<1x128xf32>
    %26 = arith.mulf %25, %0 : vector<1x128xf32>
    %c7 = arith.constant 7 : index
    %27 = memref.load %arg1[%c7] : memref<16xf32, #tpu.memory_space<smem>>
    %28 = vector.broadcast %27 : f32 to vector<1x128xf32>
    %29 = arith.addf %26, %28 : vector<1x128xf32>
    %30 = math.tanh %29 : vector<1x128xf32>
    %c12 = arith.constant 12 : index
    %31 = memref.load %arg1[%c12] : memref<16xf32, #tpu.memory_space<smem>>
    %32 = vector.broadcast %31 : f32 to vector<1x128xf32>
    %33 = arith.mulf %32, %30 : vector<1x128xf32>
    %34 = arith.addf %23, %33 : vector<1x128xf32>
    %c3 = arith.constant 3 : index
    %35 = memref.load %arg1[%c3] : memref<16xf32, #tpu.memory_space<smem>>
    %36 = vector.broadcast %35 : f32 to vector<1x128xf32>
    %37 = arith.mulf %36, %0 : vector<1x128xf32>
    %c8 = arith.constant 8 : index
    %38 = memref.load %arg1[%c8] : memref<16xf32, #tpu.memory_space<smem>>
    %39 = vector.broadcast %38 : f32 to vector<1x128xf32>
    %40 = arith.addf %37, %39 : vector<1x128xf32>
    %41 = math.tanh %40 : vector<1x128xf32>
    %c13 = arith.constant 13 : index
    %42 = memref.load %arg1[%c13] : memref<16xf32, #tpu.memory_space<smem>>
    %43 = vector.broadcast %42 : f32 to vector<1x128xf32>
    %44 = arith.mulf %43, %41 : vector<1x128xf32>
    %45 = arith.addf %34, %44 : vector<1x128xf32>
    %c4 = arith.constant 4 : index
    %46 = memref.load %arg1[%c4] : memref<16xf32, #tpu.memory_space<smem>>
    %47 = vector.broadcast %46 : f32 to vector<1x128xf32>
    %48 = arith.mulf %47, %0 : vector<1x128xf32>
    %c9 = arith.constant 9 : index
    %49 = memref.load %arg1[%c9] : memref<16xf32, #tpu.memory_space<smem>>
    %50 = vector.broadcast %49 : f32 to vector<1x128xf32>
    %51 = arith.addf %48, %50 : vector<1x128xf32>
    %52 = math.tanh %51 : vector<1x128xf32>
    %c14 = arith.constant 14 : index
    %53 = memref.load %arg1[%c14] : memref<16xf32, #tpu.memory_space<smem>>
    %54 = vector.broadcast %53 : f32 to vector<1x128xf32>
    %55 = arith.mulf %54, %52 : vector<1x128xf32>
    %56 = arith.addf %45, %55 : vector<1x128xf32>
    %c15 = arith.constant 15 : index
    %57 = memref.load %arg1[%c15] : memref<16xf32, #tpu.memory_space<smem>>
    %58 = vector.broadcast %57 : f32 to vector<1x128xf32>
    %59 = arith.addf %56, %58 : vector<1x128xf32>
    %c0_2 = arith.constant 0 : index
    %c0_3 = arith.constant 0 : index
    %60 = vector.load %arg3[%c0_2, %c0_3] : memref<1x128xf32, #tpu.memory_space<vmem>>, vector<1x128xf32>
    tpu.vector_store %arg3[%c0_2, %c0_3], %59 {strides = array<i32>} : memref<1x128xf32, #tpu.memory_space<vmem>>, vector<1x128xf32>,
    return
  }
  func.func @transform_0(%arg0: i32) -> i32 {
    %c0_i32 = arith.constant 0 : i32
    %c0_i32_0 = arith.constant 0 : i32
    return %c0_i32 : i32
  }
  func.func @transform_1(%arg0: i32) -> (i32, i32) {
    %c0_i32 = arith.constant 0 : i32
    %c0_i32_0 = arith.constant 0 : i32
    return %arg0, %c0_i32 : i32, i32
  }
  func.func @transform_2(%arg0: i32) -> (i32, i32) {
    %c0_i32 = arith.constant 0 : i32
    %c0_i32_0 = arith.constant 0 : i32
    return %arg0, %c0_i32 : i32, i32
  }
}

</mosaic_0001>

<bundles_post_ra>
// kernel: tpu_custom_call.1
= control target key start
LH: loop header
LB: loop body
LE: loop exit
PB: predicated region body
PF: predicated region fallthrough
CT: control target
= control target key end

     0   :  { %7 = vsyncpa [#allocation5], 0  ;;  %s247_s0 = inlined_call_operand.hbm [shape: f32[16], index: 0, kind: input, shape index: {}]   ;;  %s248_s1 = inlined_call_operand.hbm [shape: f32[1,128], index: 1, kind: input, shape index: {}]   ;;  %s249_s2 = inlined_call_operand.hbm [shape: f32[1,128], index: 2, kind: output, shape index: {}]  }
   0x1   :  { %8 = vsyncpa [#allocation3], 0 }
   0x2   :  { %9 = vsyncpa [#allocation4], 0  ;;  %s15_s11 = sshll.u32 %s247_s0, 4  ;;  %s24_s14 = sshll.u32 %s248_s1, 4  ;;  %s16_s11 = int_to_ptr.hbm [resolvable:$true] %s15_s11  ;;  %s25_s14 = int_to_ptr.hbm [resolvable:$true] %s24_s14 }
   0x3   :  { %s211_s15 = smov [#allocation2]   ;;  %s212_s16 = smov [#allocation6]  }
   0x4   :  { %18 = dma.hbm_to_smem %s16_s11, 16, %s211_s15, [#allocation5]  }
   0x5   :  { %s26_s17 = sshll.u32 %s212_s16, 4  ;;  %s27_s17 = int_to_ptr.vmem [resolvable:$true] %s26_s17 }
   0x6   :  { %29 = dma.hbm_to_vmem [thread:$0]  %s25_s14, 16, %s27_s17, [#allocation3]  }
   0x7   :  { %205 = dma.done.wait [#allocation5], 16  }
   0x8   :  { %206 = vsyncadd [#allocation5], 4294967280 }
   0x9   :  { %207 = dma.done.wait [#allocation3], 16  }
   0xa   :  { %208 = vsyncadd [#allocation3], 4294967280 }
   0xb   :  { %38 = sfence }
   0xc   :  { %s40_s18 = sld [smem:[#allocation2]]  ;;  %v39_v0 = vld [vmem:[#allocation6] sm:$0x1]  ;;  %s213_s4 = smov [#allocation7]  }
   0xd   :  { %s117_s19 = sld [smem:[#allocation2 + $0x5]]  ;;  %s104_s5 = sshll.u32 %s213_s4, 4  ;;  %s105_s5 = int_to_ptr.vmem [resolvable:$true] %s104_s5 }
   0xe   :  { %s119_s0 = sld [smem:[#allocation2 + $0x1]]  ;;  %s106_s8 = sshll.u32 %s249_s2, 4  ;;  %s107_s8 = int_to_ptr.hbm [resolvable:$true] %s106_s8 }
   0xf   :  { %s120_s20 = sld [smem:[#allocation2 + $0x6]] }
  0x10   :  { %s235_s21 = sld [smem:[#allocation2 + $0xa]] }
  0x11   :  { %s122_s1 = sld [smem:[#allocation2 + $0x2]] }
  0x12   :  { %v41_v1 = vstv %s40_s18  ;;  %s123_s22 = sld [smem:[#allocation2 + $0x7]] }
  0x13   :  { %v42_v2 = vmul.f32 %v41_v1, %v39_v0  ;;  %v44_v3 = vstv %s117_s19  ;;  %s237_s23 = sld [smem:[#allocation2 + $0xb]] }
  0x14   :  { %v52_v5 = vstv %s119_s0  ;;  %s125_s24 = sld [smem:[#allocation2 + $0x3]] }
  0x15   :  { %v45_v4 = vadd.f32 %v44_v3, %v42_v2  ;;  %v53_v6 = vmul.f32 %v52_v5, %v39_v0  ;;  %v55_v7 = vstv %s120_s20  ;;  %s126_s25 = sld [smem:[#allocation2 + $0x8]] }
  0x16   :  { %s239_s26 = sld [smem:[#allocation2 + $0xc]]  ;;  %v48_v14 = vstv %s235_s21 }
  0x17   :  { %135 = vtanh.f32 %v45_v4  ;;  %v56_v8 = vadd.f32 %v55_v7, %v53_v6  ;;  %v63_v9 = vstv %s122_s1  ;;  %s128_s27 = sld [smem:[#allocation2 + $0x4]] }
  0x18   :  { %v64_v10 = vmul.f32 %v63_v9, %v39_v0  ;;  %v66_v11 = vstv %s123_s22  ;;  %s129_s28 = sld [smem:[#allocation2 + $0x9]] }
  0x19   :  { %137 = vtanh.f32 %v56_v8  ;;  %s127_s29 = sld [smem:[#allocation2 + $0xd]]  ;;  %v59_v18 = vstv %s237_s23 }
  0x1a   :  { %v67_v12 = vadd.f32 %v66_v11, %v64_v10  ;;  %v74_v13 = vstv %s125_s24  ;;  %s130_s30 = sld [smem:[#allocation2 + $0xe]] }
  0x1b   :  { %v75_v15 = vmul.f32 %v74_v13, %v39_v0  ;;  %v77_v16 = vstv %s126_s25  ;;  %s131_s3 = sld [smem:[#allocation2 + $0xf]] }
  0x1c   :  { %139 = vtanh.f32 %v67_v12  ;;  %v70_v26 = vstv %s239_s26 }
  0x1d   :  { %v136_v17 = vpop.eup %135  ;;  %v78_v19 = vadd.f32 %v77_v16, %v75_v15  ;;  %v85_v20 = vstv %s128_s27 }
  0x1e   :  { %v49_v21 = vmul.f32 %v136_v17, %v48_v14  ;;  %v86_v22 = vmul.f32 %v85_v20, %v39_v0  ;;  %v88_v23 = vstv %s129_s28 }
  0x1f   :  { %v138_v24 = vpop.eup %137  ;;  %141 = vtanh.f32 %v78_v19  ;;  %v81_v31 = vstv %s127_s29 }
  0x20   :  { %v60_v25 = vmul.f32 %v138_v24, %v59_v18  ;;  %v89_v27 = vadd.f32 %v88_v23, %v86_v22  ;;  %v92_v35 = vstv %s130_s30 }
  0x21   :  { %v96_v39 = vstv %s131_s3 }
  0x22   :  { %v140_v28 = vpop.eup %139  ;;  %v61_v29 = vadd.f32 %v60_v25, %v49_v21  ;;  %143 = vtanh.f32 %v89_v27 }
  0x23   :  { %v71_v30 = vmul.f32 %v140_v28, %v70_v26 }
  0x25   :  { %v142_v32 = vpop.eup %141  ;;  %v72_v33 = vadd.f32 %v71_v30, %v61_v29 }
  0x26   :  { %v82_v34 = vmul.f32 %v142_v32, %v81_v31 }
  0x28   :  { %v144_v36 = vpop.eup %143  ;;  %v83_v37 = vadd.f32 %v82_v34, %v72_v33 }
  0x29   :  { %v93_v38 = vmul.f32 %v144_v36, %v92_v35 }
  0x2b   :  { %v94_v40 = vadd.f32 %v93_v38, %v83_v37 }
  0x2d   :  { %v97_v41 = vadd.f32 %v96_v39, %v94_v40 }
  0x2f   :  { %98 = vst [vmem:[#allocation7] sm:$0x1] %v97_v41 }
  0x30   :  { %109 = dma.vmem_to_hbm [thread:$0]  %s105_s5, 16, %s107_s8, [#allocation4]  }
  0x31   :  { %209 = dma.done.wait [#allocation4], 16  }
  0x32   :  { %210 = vsyncadd [#allocation4], 4294967280 }
  0x33   :  { %114 = vsyncpa [#allocation3], 1 }
  0x34   :  { %115 = vsyncpa [#allocation4], 1 }
  0x35   :  { %116 = vsyncpa [#allocation5], 1 }

</bundles_post_ra>
